<compile_context>
chip_gen: v5e
topology: v5e:2x2
jax: 0.10.0
libtpu: 0.0.40
codegen_flags: <defaults>
</compile_context>

<pallas_src>
import functools

import jax
import jax.numpy as jnp
from jax.experimental import pallas as pl
from jax.experimental.pallas import tpu as pltpu

ALPHA = 1.0
GAMMA = 2  # Python int -> lowered as an explicit repeated multiply (no pow)


def _cdiv(a, b):
    return -(-a // b)


def _round_up(x, m):
    return ((x + m - 1) // m) * m


@functools.lru_cache(maxsize=None)
def _chip_config():
    """Per-TPU-generation grid / VMEM configuration."""
    kind = ""
    try:
        kind = jax.devices()[0].device_kind.lower()
    except Exception:
        pass
    if "v7" in kind:
        # 2 TensorCores, 64 MiB VMEM per core: split the batch across cores.
        return {
            "num_splits": 2,
            "dim_sems": (getattr(pltpu, "CORE_PARALLEL", "parallel"),
                         getattr(pltpu, "PARALLEL", "parallel")),
            "vmem_limit": 48 * 1024 * 1024,
            "sizing_budget": 24 * 1024 * 1024,
        }
    if ("v6" in kind) or ("v5" in kind) or ("v4" in kind):
        # Single TensorCore (v5e/v6e) with 128 MiB VMEM: no split, big blocks.
        return {
            "num_splits": 1,
            "dim_sems": ("parallel", "parallel"),
            "vmem_limit": 96 * 1024 * 1024,
            "sizing_budget": 48 * 1024 * 1024,
        }
    return {
        "num_splits": 1,
        "dim_sems": ("parallel", "parallel"),
        "vmem_limit": 32 * 1024 * 1024,
        "sizing_budget": 16 * 1024 * 1024,
    }


def _make_kernel(alpha, gamma, inv_n):
    def kernel(logits_ref, labels_ref, out_ref):
        logits = logits_ref[...].astype(jnp.float32)   # (tile_n, C) f32 in-register
        labels = labels_ref[...]                        # (tile_n, 1) int32
        tn, c = logits.shape

        # Numerically stable log-softmax pieces.
        m = jnp.max(logits, axis=1, keepdims=True)      # (tile_n, 1)
        shifted = logits - m                             # <= 0 everywhere
        sum_exp = jnp.sum(jnp.exp(shifted), axis=1, keepdims=True)

        # Fused gather + validity mask: pick the shifted logit of the labelled
        # class with a min-reduce over a 1.0 sentinel (> any shifted value).
        # Rows whose label matches no class (ragged-tail rows carry label=-1,
        # out-of-range user labels too) come back as exactly 1.0.
        class_ids = jax.lax.broadcasted_iota(jnp.int32, (tn, c), 1)  # cheap lane iota
        shifted_t = jnp.min(jnp.where(class_ids == labels, shifted, 1.0),
                            axis=1, keepdims=True)       # (tile_n, 1)
        valid = shifted_t <= 0.0

        ce = jnp.log(sum_exp) - shifted_t                # per-row cross entropy
        p_t = jnp.exp(-ce)                               # softmax prob of the label
        one_m = 1.0 - p_t
        w = one_m
        for _ in range(gamma - 1):                       # gamma=2 -> one extra mul
            w = w * one_m
        fl = w * ce if alpha == 1.0 else (alpha * w) * ce

        # select (not multiply): garbage tail rows may hold Inf/NaN but never leak
        fl = jnp.where(valid, fl, 0.0)

        # per-tile partial mean into this tile's own lane-dense (8, 128) block
        out_ref[...] = jnp.full((8, 128), jnp.sum(fl) * inv_n, dtype=jnp.float32)

    return kernel


@functools.partial(jax.jit, static_argnames=("max_tile_rows", "num_splits"))
def focal_loss(outputs, labels, *, max_tile_rows=None, num_splits=None):
    """Mean focal loss (alpha=1, gamma=2) of (N, C) logits vs (N,) int labels."""
    n, c = outputs.shape
    in_bytes = jnp.dtype(outputs.dtype).itemsize
    cfg = _chip_config()
    splits = int(num_splits) if num_splits is not None else cfg["num_splits"]
    splits = max(1, splits)

    # --- row-tile sizing ------------------------------------------------------
    # VMEM per row ~= C * (2*in_bytes   [double-buffered logits block]
    #                      + 24         [peak f32/i32 (tile_n, C) temporaries])
    bytes_per_row = c * (2 * in_bytes + 24) + 16
    tile_cap = max(8, (cfg["sizing_budget"] // bytes_per_row) // 8 * 8)
    tile_cap = min(tile_cap, 65536)
    if max_tile_rows is not None:
        tile_cap = min(tile_cap, max(8, (int(max_tile_rows) // 8) * 8))

    rows_per_split = _cdiv(n, splits)
    tiles_per_split = _cdiv(rows_per_split, tile_cap)
    tile_n = _round_up(_cdiv(rows_per_split, tiles_per_split), 8)

    # Never emit a logits block that lies entirely past row N (only possible
    # for tiny N with a multi-split grid): fall back to a single split.
    if splits > 1 and (splits * tiles_per_split - 1) * tile_n >= n:
        splits = 1
        tiles_per_split = _cdiv(n, tile_cap)
        tile_n = _round_up(_cdiv(n, tiles_per_split), 8)

    rows_padded = splits * tiles_per_split * tile_n
    num_blocks = splits * tiles_per_split
    dim_sems = cfg["dim_sems"] if splits == cfg["num_splits"] else ("parallel", "parallel")

    # Pad ONLY the tiny labels array (with -1) so every ragged/padded tail row
    # fails the class match inside the kernel; the big logits array is read
    # ragged by Pallas with no XLA-side copy.
    labels2d = labels.astype(jnp.int32).reshape(n, 1)
    if rows_padded != n:
        labels2d = jnp.pad(labels2d, ((0, rows_padded - n), (0, 0)),
                           constant_values=-1)

    kernel = _make_kernel(ALPHA, GAMMA, 1.0 / float(n))

    grid_spec = pltpu.PrefetchScalarGridSpec(
        num_scalar_prefetch=0,
        grid=(splits, tiles_per_split),
        in_specs=[
            pl.BlockSpec((tile_n, c), lambda s, t: (s * tiles_per_split + t, 0)),
            pl.BlockSpec((tile_n, 1), lambda s, t: (s * tiles_per_split + t, 0)),
        ],
        out_specs=pl.BlockSpec((8, 128), lambda s, t: (s * tiles_per_split + t, 0)),
    )

    cost = pl.CostEstimate(
        flops=8 * rows_padded * c,
        transcendentals=rows_padded * c + 2 * rows_padded,
        bytes_accessed=rows_padded * c * in_bytes + rows_padded * 4
        + num_blocks * 8 * 128 * 4,
    )

    out = pl.pallas_call(
        kernel,
        out_shape=jax.ShapeDtypeStruct((num_blocks * 8, 128), jnp.float32),
        grid_spec=grid_spec,
        compiler_params=pltpu.CompilerParams(
            dimension_semantics=dim_sems,
            vmem_limit_bytes=cfg["vmem_limit"],
        ),
        cost_estimate=cost,
    )(outputs, labels2d)

    # each tile wrote (sum over its rows) / N into element [g*8, 0]
    return jnp.sum(out[0::8, 0])


def focal_loss_ref(outputs, labels):
    """Pure-JAX reference matching the PyTorch FocalLoss forward."""
    logp = jax.nn.log_softmax(outputs.astype(jnp.float32), axis=1)
    n = outputs.shape[0]
    logp_t = logp[jnp.arange(n), labels]
    ce = -logp_t
    p_t = jnp.exp(logp_t)
    fl = ALPHA * (1.0 - p_t) ** GAMMA * ce
    return jnp.mean(fl)


if __name__ == "__main__":
    key = jax.random.PRNGKey(0)
    k1, k2 = jax.random.split(key)

    # 1) small, block-aligned f32 case
    N, C = 8, 128
    outputs = jax.random.normal(k1, (N, C), dtype=jnp.float32)
    labels = jax.random.randint(k2, (N,), 0, C, dtype=jnp.int32)
    loss = focal_loss(outputs, labels)
    jax.block_until_ready(loss)
    ref = focal_loss_ref(outputs, labels)
    assert jnp.allclose(loss, ref, rtol=1e-5, atol=1e-5), (loss, ref)

    # 2) bf16 inputs with N not block-aligned (ragged logits read + label padding)
    N2, C2 = 37, 256
    outputs2 = jax.random.normal(k1, (N2, C2), dtype=jnp.bfloat16)
    labels2 = jax.random.randint(k2, (N2,), 0, C2, dtype=jnp.int32)
    loss2 = focal_loss(outputs2, labels2)
    jax.block_until_ready(loss2)
    ref2 = focal_loss_ref(outputs2, labels2)
    assert jnp.allclose(loss2, ref2, rtol=1e-3, atol=1e-3), (loss2, ref2)

    # 3) multi-tile streaming path (forced small tile) with a ragged tail
    N3, C3 = 300, 128
    outputs3 = jax.random.normal(k1, (N3, C3), dtype=jnp.float32)
    labels3 = jax.random.randint(k2, (N3,), 0, C3, dtype=jnp.int32)
    loss3 = focal_loss(outputs3, labels3, max_tile_rows=64)
    jax.block_until_ready(loss3)
    ref3 = focal_loss_ref(outputs3, labels3)
    assert jnp.allclose(loss3, ref3, rtol=1e-5, atol=1e-5), (loss3, ref3)

    # 4) two-split grid (the default layout on v7x), forced here for coverage
    loss4 = focal_loss(outputs3, labels3, max_tile_rows=64, num_splits=2)
    jax.block_until_ready(loss4)
    assert jnp.allclose(loss4, ref3, rtol=1e-5, atol=1e-5), (loss4, ref3)

    print("KERNEL_OK")
</pallas_src>

<mosaic_0001>
module attributes {stable_mosaic.version = 11 : i64} {
  func.func @kernel(%arg0: i32, %arg1: i32, %arg2: memref<8x128xf32, #tpu.memory_space<vmem>>, %arg3: memref<8x1xi32, #tpu.memory_space<vmem>>, %arg4: memref<8x128xf32, #tpu.memory_space<vmem>>) attributes {dimension_semantics = [#tpu.dimension_semantics<parallel>, #tpu.dimension_semantics<parallel>], iteration_bounds = array<i64: 1, 1>, scalar_prefetch = 0 : i64, scratch_operands = 0 : i64, tpu.core_type = #tpu.core_type<tc>, window_params = [{transform_indices = @transform_0, window_bounds = array<i64: 8, 128>}, {transform_indices = @transform_1, window_bounds = array<i64: 8, 1>}, {transform_indices = @transform_2, window_bounds = array<i64: 8, 128>}]} {
    %c0 = arith.constant 0 : index
    %c0_0 = arith.constant 0 : index
    %0 = vector.load %arg2[%c0, %c0_0] : memref<8x128xf32, #tpu.memory_space<vmem>>, vector<8x128xf32>
    %c0_1 = arith.constant 0 : index
    %c0_2 = arith.constant 0 : index
    %1 = vector.load %arg3[%c0_1, %c0_2] : memref<8x1xi32, #tpu.memory_space<vmem>>, vector<8x1xi32>
    %cst = arith.constant dense<0xFF800000> : vector<8xf32>
    %2 = vector.multi_reduction <maximumf>, %0, %cst [1] : vector<8x128xf32> to vector<8xf32>
    %3 = vector.shape_cast %2 : vector<8xf32> to vector<8x1xf32>
    %4 = vector.broadcast %3 : vector<8x1xf32> to vector<8x128xf32>
    %5 = arith.subf %0, %4 : vector<8x128xf32>
    %6 = math.exp %5 : vector<8x128xf32>
    %cst_3 = arith.constant dense<0.000000e+00> : vector<8xf32>
    %7 = vector.multi_reduction <add>, %6, %cst_3 [1] : vector<8x128xf32> to vector<8xf32>
    %8 = vector.shape_cast %7 : vector<8xf32> to vector<8x1xf32>
    %9 = tpu.iota {dimensions = array<i32: 1>} : vector<8x128xi32>
    %10 = vector.broadcast %1 : vector<8x1xi32> to vector<8x128xi32>
    %11 = arith.cmpi eq, %9, %10 : vector<8x128xi32>
    %cst_4 = arith.constant 1.000000e+00 : f32
    %12 = vector.broadcast %cst_4 : f32 to vector<8x128xf32>
    %13 = arith.select %11, %5, %12 : vector<8x128xi1>, vector<8x128xf32>
    %cst_5 = arith.constant dense<0x7F800000> : vector<8xf32>
    %14 = vector.multi_reduction <minimumf>, %13, %cst_5 [1] : vector<8x128xf32> to vector<8xf32>
    %15 = vector.shape_cast %14 : vector<8xf32> to vector<8x1xf32>
    %cst_6 = arith.constant 0.000000e+00 : f32
    %16 = vector.broadcast %cst_6 : f32 to vector<8x1xf32>
    %17 = arith.cmpf ole, %15, %16 : vector<8x1xf32>
    %18 = math.log %8 : vector<8x1xf32>
    %19 = arith.subf %18, %15 : vector<8x1xf32>
    %cst_7 = arith.constant 0.000000e+00 : f32
    %20 = vector.broadcast %cst_7 : f32 to vector<8x1xf32>
    %21 = arith.subf %20, %19 : vector<8x1xf32>
    %22 = math.exp %21 : vector<8x1xf32>
    %cst_8 = arith.constant 1.000000e+00 : f32
    %23 = vector.broadcast %cst_8 : f32 to vector<8x1xf32>
    %24 = arith.subf %23, %22 : vector<8x1xf32>
    %25 = arith.mulf %24, %24 : vector<8x1xf32>
    %26 = arith.mulf %25, %19 : vector<8x1xf32>
    %cst_9 = arith.constant 0.000000e+00 : f32
    %27 = vector.broadcast %cst_9 : f32 to vector<8x1xf32>
    %28 = arith.select %17, %26, %27 : vector<8x1xi1>, vector<8x1xf32>
    %29 = vector.shape_cast %28 : vector<8x1xf32> to vector<1x8x1xf32>
    %cst_10 = arith.constant dense<0.000000e+00> : vector<1xf32>
    %30 = vector.multi_reduction <add>, %29, %cst_10 [1, 2] : vector<1x8x1xf32> to vector<1xf32>
    %31 = vector.shape_cast %30 : vector<1xf32> to vector<1x1x1xf32>
    %32 = vector.extract %31[0, 0, 0] : f32 from vector<1x1x1xf32>
    %cst_11 = arith.constant 1.250000e-01 : f32
    %33 = arith.mulf %32, %cst_11 : f32
    %34 = vector.broadcast %33 : f32 to vector<8x128xf32>
    %c0_12 = arith.constant 0 : index
    %c0_13 = arith.constant 0 : index
    %35 = vector.load %arg4[%c0_12, %c0_13] : memref<8x128xf32, #tpu.memory_space<vmem>>, vector<8x128xf32>
    tpu.vector_store %arg4[%c0_12, %c0_13], %34 {strides = array<i32>} : memref<8x128xf32, #tpu.memory_space<vmem>>, vector<8x128xf32>,
    return
  }
  func.func @transform_0(%arg0: i32, %arg1: i32) -> (i32, i32) {
    %c1_i32 = arith.constant 1 : i32
    %0 = arith.muli %arg0, %c1_i32 : i32
    %1 = arith.addi %0, %arg1 : i32
    %c0_i32 = arith.constant 0 : i32
    %c0_i32_0 = arith.constant 0 : i32
    return %1, %c0_i32 : i32, i32
  }
  func.func @transform_1(%arg0: i32, %arg1: i32) -> (i32, i32) {
    %c1_i32 = arith.constant 1 : i32
    %0 = arith.muli %arg0, %c1_i32 : i32
    %1 = arith.addi %0, %arg1 : i32
    %c0_i32 = arith.constant 0 : i32
    %c0_i32_0 = arith.constant 0 : i32
    return %1, %c0_i32 : i32, i32
  }
  func.func @transform_2(%arg0: i32, %arg1: i32) -> (i32, i32) {
    %c1_i32 = arith.constant 1 : i32
    %0 = arith.muli %arg0, %c1_i32 : i32
    %1 = arith.addi %0, %arg1 : i32
    %c0_i32 = arith.constant 0 : i32
    %c0_i32_0 = arith.constant 0 : i32
    return %1, %c0_i32 : i32, i32
  }
}

</mosaic_0001>

<bundles_post_ra>
// kernel: focal_loss.1
= control target key start
LH: loop header
LB: loop body
LE: loop exit
PB: predicated region body
PF: predicated region fallthrough
CT: control target
= control target key end

     0   :  { %v144_v1 = vmov 0   ;;  %v65_v7 = vlaneseq  ;;  %vm85_vm1 = vcmask 7168   ;;  %s169_s0 = inlined_call_operand.vmem [shape: f32[8,128], index: 0, kind: input, shape index: {}]   ;;  %s170_s1 = inlined_call_operand.vmem [shape: s32[8,1], index: 1, kind: input, shape index: {}]   ;;  %s171_s2 = inlined_call_operand.vmem [shape: f32[8,128], index: 2, kind: output, shape index: {}]  }
   0x1   :  { %v56_v0 = vld [vmem:[%s169_s0] sm:$0xff]  ;;  %137 = vset.pattern.permute.xlu0 %v144_v1 }
   0x2   :  { %58 = vmax.xlane.f32.xlu0 %v56_v0  ;;  %v57_v2 = vld [vmem:[%s170_s1] sm:$0xff]  ;;  %v66_v8 = vand.u32 127, %v65_v7 }
  0x16   :  { %68 = vperm.xlu0 %137, %v57_v2  }
  0x75   :  { %v59_v3 = vpop.xlane.xlu0 %58 }
  0x76   :  { %v60_v4 = vsub.f32 %v56_v0, %v59_v3 }
  0x78   :  { %v61_v5 = vmul.f32 1.442695, %v60_v4 }
  0x7a   :  { %138 = vpow2.f32 %v61_v5 }
  0x80   :  { %v139_v6 = vpop.eup %138 }
  0x81   :  { %63 = vadd.xlane.f32.xlu1 %v139_v6 }
  0x88   :  { %v69_v9 = vpop.permute.xlu0 %68 }
  0x89   :  { %vm70_vm0 = vcmp.eq.s32.totalorder %v66_v8, %v69_v9 }
  0x8a   :  { %v71_v10 = vsel %vm70_vm0, %v60_v4, 1.0 }
  0x8b   :  { %72 = vmin.xlane.f32.xlu1 %v71_v10 }
  0xf4   :  { %v64_v11 = vpop.xlane.xlu1 %63 }
  0xf5   :  { %140 = vlog2.f32 %v64_v11 }
  0xfb   :  { %v141_v12 = vpop.eup %140 }
  0xfc   :  { %v76_v13 = vmul.f32 0.6931472, %v141_v12 }
  0xfe   :  { %v73_v14 = vpop.xlane.xlu1 %72 }
  0xff   :  { %v77_v15 = vsub.f32 %v76_v13, %v73_v14  ;;  %vm74_vm2 = vcmp.le.f32.partialorder %v73_v14, 0.0 }
 0x101   :  { %v78_v16 = vsub.f32 0.0, %v77_v15 }
 0x103   :  { %v79_v17 = vmul.f32 1.442695, %v78_v16 }
 0x105   :  { %142 = vpow2.f32 %v79_v17 }
 0x10b   :  { %v143_v18 = vpop.eup %142 }
 0x10c   :  { %v81_v19 = vsub.f32 1.0, %v143_v18 }
 0x10e   :  { %v82_v20 = vmul.f32 %v81_v19, %v81_v19 }
 0x110   :  { %v83_v21 = vmul.f32 %v82_v20, %v77_v15 }
 0x112   :  { %v84_v22 = vsel %vm74_vm2, %v83_v21, 0.0 }
 0x113   :  { %v86_v23 = vsel %vm85_vm1, %v84_v22, 0.0 }
 0x114   :  { %87 = vadd.xlane.f32.xlu2 %v86_v23 }
 0x187   :  { %v88_v24 = vpop.xlane.xlu2 %87 }
 0x188   :  { %v89_v25 = vrot.slane %v88_v24, 4 }
 0x18a   :  { %v90_v26 = vadd.f32 %v89_v25, %v88_v24 }
 0x18c   :  { %v91_v27 = vrot.slane %v90_v26, 2 }
 0x18e   :  { %v92_v28 = vadd.f32 %v91_v27, %v90_v26 }
 0x190   :  { %v93_v29 = vrot.slane %v92_v28, 1 }
 0x192   :  { %v94_v30 = vadd.f32 %v93_v29, %v92_v28 }
 0x194   :  { %134 = vpush %v94_v30 }
 0x1c5   :  { %s135_s0 = spop %134 }
 0x1c6   :  { %s96_s1 = smul.f32 0.125, %s135_s0 }
 0x1c8   :  { %v97_v31 = vstv %s96_s1 }
 0x1c9   :  { %98 = vst [vmem:[%s171_s2] sm:$0xff] %v97_v31 }

</bundles_post_ra>
